<compile_context>
chip_gen: v7x
topology: tpu7x:2x2x1
jax: 0.10.0
libtpu: 0.0.40
codegen_flags: <defaults>
</compile_context>

<pallas_src>
import jax
import jax.numpy as jnp
from jax.experimental import pallas as pl
from jax.experimental.pallas import tpu as pltpu


def _round_up(x, m):
    return (x + m - 1) // m * m


def _cdiv(a, b):
    return -(-a // b)


def _default_tile_budget_bytes():
    # Per-generation x-tile budget (BlockSpec double-buffers it => ~2x this in VMEM).
    try:
        kind = jax.devices()[0].device_kind.lower()
    except Exception:
        return 4 * 1024 * 1024
    if "v5 lite" in kind or "v5e" in kind or "v5lite" in kind:
        return 2 * 1024 * 1024        # v5e: 16 MiB scoped default; stay conservative
    if "v6" in kind:
        return 5 * 1024 * 1024        # v6e: ~10 MiB double-buffered, plenty of headroom
    if "v7" in kind:
        return 7 * 1024 * 1024        # v7x: amortize step overhead vs 3.2 TB/s HBM
    return 4 * 1024 * 1024


def _make_attention_kernel(seq_len, seq_tile, num_seq_tiles):
    """seq_len / seq_tile / num_seq_tiles are static Python ints."""
    pad_rows = num_seq_tiles * seq_tile - seq_len   # OOB rows in the final seq tile

    def kernel(x_ref, w_ref, o_ref, m_ref, l_ref, acc_ref):
        t = pl.program_id(1)
        bt, d = acc_ref.shape

        # ---- init online-softmax state on the first sequence tile ----
        @pl.when(t == 0)
        def _():
            m_ref[...] = jnp.full(m_ref.shape, -jnp.inf, m_ref.dtype)
            l_ref[...] = jnp.zeros(l_ref.shape, l_ref.dtype)
            acc_ref[...] = jnp.zeros(acc_ref.shape, acc_ref.dtype)

        # ---- ragged seq tail: zero the OOB rows of the streamed tile (gated to the
        #      last tile only) so the MXU never multiplies uninitialized VMEM
        #      (p == 0 times NaN would still be NaN). Input-ref writes stay in VMEM. ----
        if pad_rows:
            @pl.when(t == num_seq_tiles - 1)
            def _():
                valid = seq_tile - pad_rows
                x_ref[:, valid:, :] = jnp.zeros(
                    (x_ref.shape[0], pad_rows, x_ref.shape[2]), x_ref.dtype)

        x = x_ref[...]                 # (Bt, Tt, D) input dtype — never upcast wholesale
        w = w_ref[...]                 # (Bt, 1, D) input dtype, resident

        # Score on the MXU (flash QK^T with a length-1 query), f32 accumulate.
        s = jnp.einsum("bod,btd->bot", w, x,
                       preferred_element_type=jnp.float32)          # (Bt, 1, Tt)

        if pad_rows:
            pos = t * seq_tile + jax.lax.broadcasted_iota(jnp.int32, s.shape, 2)
            s = jnp.where(pos < seq_len, s, -jnp.inf)

        # ---- online softmax update; all stats are (Bt, 1, 1) f32 ----
        m_prev = m_ref[...]
        m_new = jnp.maximum(m_prev, jnp.max(s, axis=-1, keepdims=True))
        alpha = jnp.exp(m_prev - m_new)
        p = jnp.exp(s - m_new)                                       # (Bt, 1, Tt) f32
        l_ref[...] = alpha * l_ref[...] + jnp.sum(p, axis=-1, keepdims=True)

        # Weighted sum on the MXU (flash PV), f32 accumulate.      (Bt, 1, D)
        pv = jnp.einsum("bot,btd->bod", p.astype(x.dtype), x,
                        preferred_element_type=jnp.float32)
        acc_ref[...] = alpha.reshape(bt, 1) * acc_ref[...] + pv.reshape(bt, d)
        m_ref[...] = m_new

        # ---- finalize on the last sequence tile ----
        @pl.when(t == num_seq_tiles - 1)
        def _():
            l = l_ref[...].reshape(bt, 1)
            inv = pl.reciprocal(l, approx=True)      # EUP slot, not a VALU divide
            inv = inv * (2.0 - l * inv)              # one Newton step -> ~f32 accuracy
            o_ref[...] = (acc_ref[...] * inv).astype(o_ref.dtype)

    return kernel


def attention_forward(x, weight, bias=None, *, x_tile_budget_bytes=None):
    """x: (B, T, D); weight: (1, D) = nn.Linear(dim, 1).weight; bias: ignored.

    Returns the attention-pooled output (B, D) in x.dtype.  The Linear bias is a no-op
    for the softmax weights (softmax(s + b) == softmax(s)), so it is dropped.
    """
    B, T, D = x.shape
    del bias
    if x_tile_budget_bytes is None:
        x_tile_budget_bytes = _default_tile_budget_bytes()
    itemsize = jnp.dtype(x.dtype).itemsize
    gran = {1: 32, 2: 16}.get(itemsize, 8)     # dtype-aware sublane granularity

    # Batch tiling: dense (Bt, D) output blocks.  Bt == B for tiny batches keeps the
    # output block legal with no host-side padding; ragged B handled by partial blocks.
    Bt = 8 if B > 8 else B
    nb = _cdiv(B, Bt)
    # NOTE: on v7x, B <= 8 leaves the second TensorCore idle (nb == 1); a seq-split +
    # combine would be needed to use it for large-T small-B workloads.

    # Sequence tiling: stream x in ~budget-sized tiles; rebalance to minimize tail waste.
    per_row_bytes = Bt * D * itemsize
    tt_cap = max(gran, (x_tile_budget_bytes // per_row_bytes) // gran * gran)
    if T <= tt_cap:
        Tt, nt = T, 1                  # full-dim block: always a legal block shape
    else:
        Tt = _round_up(_cdiv(T, _cdiv(T, tt_cap)), gran)
        nt = _cdiv(T, Tt)

    # Weight pre-broadcast host-side (tiny) so the kernel needs no per-tile broadcast.
    w_b = jnp.broadcast_to(jnp.asarray(weight, x.dtype).reshape(1, 1, D), (Bt, 1, D))

    x_tile_bytes = Bt * Tt * D * itemsize
    vmem_limit = min(128 * 1024 * 1024,
                     max(32 * 1024 * 1024, int(2.5 * x_tile_bytes) + (4 << 20)))

    out = pl.pallas_call(
        _make_attention_kernel(T, Tt, nt),
        out_shape=jax.ShapeDtypeStruct((B, D), x.dtype),
        grid_spec=pltpu.PrefetchScalarGridSpec(
            num_scalar_prefetch=0,
            grid=(nb, nt),                                          # (batch, seq) tiles
            in_specs=[
                pl.BlockSpec((Bt, Tt, D), lambda b, t: (b, t, 0)),  # streamed x tile
                pl.BlockSpec((Bt, 1, D), lambda b, t: (0, 0, 0)),   # resident weight
            ],
            out_specs=pl.BlockSpec((Bt, D), lambda b, t: (b, 0)),   # resident across t
            scratch_shapes=[
                pltpu.VMEM((Bt, 1, 1), jnp.float32),   # running max   m
                pltpu.VMEM((Bt, 1, 1), jnp.float32),   # running denom l
                pltpu.VMEM((Bt, D), jnp.float32),      # running weighted sum
            ],
        ),
        compiler_params=pltpu.CompilerParams(
            dimension_semantics=("parallel", "arbitrary"),
            vmem_limit_bytes=vmem_limit),
    )(x, w_b)

    return out


if __name__ == "__main__":
    key = jax.random.PRNGKey(0)
    kx, kw, kb = jax.random.split(key, 3)

    B, T, D = 2, 8, 32
    x = jax.random.normal(kx, (B, T, D), dtype=jnp.float32)
    # nn.Linear(dim, 1): weight (1, dim), bias (1,) — deterministic init
    weight = jax.random.normal(kw, (1, D), dtype=jnp.float32) * 0.1
    bias = jax.random.normal(kb, (1,), dtype=jnp.float32) * 0.1

    out = attention_forward(x, weight, bias)
    out = jax.block_until_ready(out)

    # Pure-JAX reference of the PyTorch module (bias included; it is a softmax no-op,
    # so the bias-free kernel matches).
    s_ref = jnp.einsum("btd,od->bto", x, weight) + bias
    w_ref = jax.nn.softmax(s_ref, axis=1)
    ref = jnp.sum(w_ref * x, axis=1)

    assert out.shape == (B, D)
    assert jnp.allclose(out, ref, atol=1e-4, rtol=1e-4), \
        float(jnp.max(jnp.abs(out - ref)))

    print("KERNEL_OK")
</pallas_src>

<mosaic_0001>
module attributes {stable_mosaic.version = 11 : i64} {
  func.func @kernel(%arg0: i32, %arg1: i32, %arg2: memref<2x8x32xf32, #tpu.memory_space<vmem>>, %arg3: memref<2x1x32xf32, #tpu.memory_space<vmem>>, %arg4: memref<2x32xf32, #tpu.memory_space<vmem>>, %arg5: memref<2x1x1xf32, #tpu.memory_space<vmem>>, %arg6: memref<2x1x1xf32, #tpu.memory_space<vmem>>, %arg7: memref<2x32xf32, #tpu.memory_space<vmem>>) attributes {dimension_semantics = [#tpu.dimension_semantics<parallel>, #tpu.dimension_semantics<arbitrary>], iteration_bounds = array<i64: 1, 1>, scalar_prefetch = 0 : i64, scratch_operands = 3 : i64, tpu.core_type = #tpu.core_type<tc>, window_params = [{transform_indices = @transform_0, window_bounds = array<i64: 2, 8, 32>}, {pipeline_mode = #tpu.pipeline_mode<synchronous>, transform_indices = @transform_1, window_bounds = array<i64: 2, 1, 32>}, {transform_indices = @transform_2, window_bounds = array<i64: 2, 32>}]} {
    %c0_i32 = arith.constant 0 : i32
    %0 = arith.cmpi eq, %arg1, %c0_i32 : i32
    %1 = arith.extui %0 : i1 to i32
    %c0_i32_0 = arith.constant 0 : i32
    %2 = arith.cmpi ne, %1, %c0_i32_0 : i32
    scf.if %2 {
      %cst_27 = arith.constant 0xFF800000 : f32
      %33 = vector.broadcast %cst_27 : f32 to vector<2x1x1xf32>
      %c0_28 = arith.constant 0 : index
      %c0_29 = arith.constant 0 : index
      %c0_30 = arith.constant 0 : index
      %34 = vector.load %arg5[%c0_28, %c0_29, %c0_30] : memref<2x1x1xf32, #tpu.memory_space<vmem>>, vector<2x1x1xf32>
      tpu.vector_store %arg5[%c0_28, %c0_29, %c0_30], %33 {strides = array<i32>} : memref<2x1x1xf32, #tpu.memory_space<vmem>>, vector<2x1x1xf32>,
      %cst_31 = arith.constant 0.000000e+00 : f32
      %35 = vector.broadcast %cst_31 : f32 to vector<2x1x1xf32>
      %c0_32 = arith.constant 0 : index
      %c0_33 = arith.constant 0 : index
      %c0_34 = arith.constant 0 : index
      %36 = vector.load %arg6[%c0_32, %c0_33, %c0_34] : memref<2x1x1xf32, #tpu.memory_space<vmem>>, vector<2x1x1xf32>
      tpu.vector_store %arg6[%c0_32, %c0_33, %c0_34], %35 {strides = array<i32>} : memref<2x1x1xf32, #tpu.memory_space<vmem>>, vector<2x1x1xf32>,
      %cst_35 = arith.constant 0.000000e+00 : f32
      %37 = vector.broadcast %cst_35 : f32 to vector<2x32xf32>
      %c0_36 = arith.constant 0 : index
      %c0_37 = arith.constant 0 : index
      %38 = vector.load %arg7[%c0_36, %c0_37] : memref<2x32xf32, #tpu.memory_space<vmem>>, vector<2x32xf32>
      tpu.vector_store %arg7[%c0_36, %c0_37], %37 {strides = array<i32>} : memref<2x32xf32, #tpu.memory_space<vmem>>, vector<2x32xf32>,
    } else {
    }
    %c0 = arith.constant 0 : index
    %c0_1 = arith.constant 0 : index
    %c0_2 = arith.constant 0 : index
    %3 = vector.load %arg2[%c0, %c0_1, %c0_2] : memref<2x8x32xf32, #tpu.memory_space<vmem>>, vector<2x8x32xf32>
    %c0_3 = arith.constant 0 : index
    %c0_4 = arith.constant 0 : index
    %c0_5 = arith.constant 0 : index
    %4 = vector.load %arg3[%c0_3, %c0_4, %c0_5] : memref<2x1x32xf32, #tpu.memory_space<vmem>>, vector<2x1x32xf32>
    "tpu.trace_start"() <{level = 10 : i32, message = "bod,btd->bot"}> : () -> ()
    %cst = arith.constant dense<0.000000e+00> : vector<2x1x8xf32>
    %5 = tpu.matmul %4, %3, %cst {dimension_numbers = #tpu.dot_dimension_numbers<[2], [2], [1], [1], [0, 0, 0, 1, 1, 1], [0], [0]>} : vector<2x1x32xf32>, vector<2x8x32xf32>, vector<2x1x8xf32> -> vector<2x1x8xf32>
    "tpu.trace_stop"() : () -> ()
    %c0_6 = arith.constant 0 : index
    %c0_7 = arith.constant 0 : index
    %c0_8 = arith.constant 0 : index
    %6 = vector.load %arg5[%c0_6, %c0_7, %c0_8] : memref<2x1x1xf32, #tpu.memory_space<vmem>>, vector<2x1x1xf32>
    %cst_9 = arith.constant dense<0xFF800000> : vector<2x1xf32>
    %7 = vector.multi_reduction <maximumf>, %5, %cst_9 [2] : vector<2x1x8xf32> to vector<2x1xf32>
    %8 = vector.shape_cast %7 : vector<2x1xf32> to vector<2x1x1xf32>
    %9 = arith.maximumf %6, %8 : vector<2x1x1xf32>
    %10 = arith.subf %6, %9 : vector<2x1x1xf32>
    %11 = math.exp %10 : vector<2x1x1xf32>
    %12 = vector.broadcast %9 : vector<2x1x1xf32> to vector<2x1x8xf32>
    %13 = arith.subf %5, %12 : vector<2x1x8xf32>
    %14 = math.exp %13 : vector<2x1x8xf32>
    %c0_10 = arith.constant 0 : index
    %c0_11 = arith.constant 0 : index
    %c0_12 = arith.constant 0 : index
    %15 = vector.load %arg6[%c0_10, %c0_11, %c0_12] : memref<2x1x1xf32, #tpu.memory_space<vmem>>, vector<2x1x1xf32>
    %16 = arith.mulf %11, %15 : vector<2x1x1xf32>
    %cst_13 = arith.constant dense<0.000000e+00> : vector<2x1xf32>
    %17 = vector.multi_reduction <add>, %14, %cst_13 [2] : vector<2x1x8xf32> to vector<2x1xf32>
    %18 = vector.shape_cast %17 : vector<2x1xf32> to vector<2x1x1xf32>
    %19 = arith.addf %16, %18 : vector<2x1x1xf32>
    %c0_14 = arith.constant 0 : index
    %c0_15 = arith.constant 0 : index
    %c0_16 = arith.constant 0 : index
    %20 = vector.load %arg6[%c0_14, %c0_15, %c0_16] : memref<2x1x1xf32, #tpu.memory_space<vmem>>, vector<2x1x1xf32>
    tpu.vector_store %arg6[%c0_14, %c0_15, %c0_16], %19 {strides = array<i32>} : memref<2x1x1xf32, #tpu.memory_space<vmem>>, vector<2x1x1xf32>,
    "tpu.trace_start"() <{level = 10 : i32, message = "bot,btd->bod"}> : () -> ()
    %cst_17 = arith.constant dense<0.000000e+00> : vector<2x1x32xf32>
    %21 = tpu.matmul %14, %3, %cst_17 {dimension_numbers = #tpu.dot_dimension_numbers<[2], [1], [1], [2], [0, 0, 0, 1, 1, 2], [0], [0]>} : vector<2x1x8xf32>, vector<2x8x32xf32>, vector<2x1x32xf32> -> vector<2x1x32xf32>
    "tpu.trace_stop"() : () -> ()
    %22 = vector.shape_cast %11 : vector<2x1x1xf32> to vector<2x1xf32>
    %c0_18 = arith.constant 0 : index
    %c0_19 = arith.constant 0 : index
    %23 = vector.load %arg7[%c0_18, %c0_19] : memref<2x32xf32, #tpu.memory_space<vmem>>, vector<2x32xf32>
    %24 = vector.broadcast %22 : vector<2x1xf32> to vector<2x32xf32>
    %25 = arith.mulf %24, %23 : vector<2x32xf32>
    %26 = vector.shape_cast %21 : vector<2x1x32xf32> to vector<2x32xf32>
    %27 = arith.addf %25, %26 : vector<2x32xf32>
    %c0_20 = arith.constant 0 : index
    %c0_21 = arith.constant 0 : index
    %28 = vector.load %arg7[%c0_20, %c0_21] : memref<2x32xf32, #tpu.memory_space<vmem>>, vector<2x32xf32>
    tpu.vector_store %arg7[%c0_20, %c0_21], %27 {strides = array<i32>} : memref<2x32xf32, #tpu.memory_space<vmem>>, vector<2x32xf32>,
    %c0_22 = arith.constant 0 : index
    %c0_23 = arith.constant 0 : index
    %c0_24 = arith.constant 0 : index
    %29 = vector.load %arg5[%c0_22, %c0_23, %c0_24] : memref<2x1x1xf32, #tpu.memory_space<vmem>>, vector<2x1x1xf32>
    tpu.vector_store %arg5[%c0_22, %c0_23, %c0_24], %9 {strides = array<i32>} : memref<2x1x1xf32, #tpu.memory_space<vmem>>, vector<2x1x1xf32>,
    %c0_i32_25 = arith.constant 0 : i32
    %30 = arith.cmpi eq, %arg1, %c0_i32_25 : i32
    %31 = arith.extui %30 : i1 to i32
    %c0_i32_26 = arith.constant 0 : i32
    %32 = arith.cmpi ne, %31, %c0_i32_26 : i32
    scf.if %32 {
      %c0_27 = arith.constant 0 : index
      %c0_28 = arith.constant 0 : index
      %c0_29 = arith.constant 0 : index
      %33 = vector.load %arg6[%c0_27, %c0_28, %c0_29] : memref<2x1x1xf32, #tpu.memory_space<vmem>>, vector<2x1x1xf32>
      %34 = vector.shape_cast %33 : vector<2x1x1xf32> to vector<2x1xf32>
      %35 = tpu.reciprocal %34 {approx = true} : vector<2x1xf32> -> vector<2x1xf32>
      %36 = arith.mulf %34, %35 : vector<2x1xf32>
      %cst_30 = arith.constant 2.000000e+00 : f32
      %37 = vector.broadcast %cst_30 : f32 to vector<2x1xf32>
      %38 = arith.subf %37, %36 : vector<2x1xf32>
      %39 = arith.mulf %35, %38 : vector<2x1xf32>
      %c0_31 = arith.constant 0 : index
      %c0_32 = arith.constant 0 : index
      %40 = vector.load %arg7[%c0_31, %c0_32] : memref<2x32xf32, #tpu.memory_space<vmem>>, vector<2x32xf32>
      %41 = vector.broadcast %39 : vector<2x1xf32> to vector<2x32xf32>
      %42 = arith.mulf %40, %41 : vector<2x32xf32>
      %c0_33 = arith.constant 0 : index
      %c0_34 = arith.constant 0 : index
      %43 = vector.load %arg4[%c0_33, %c0_34] : memref<2x32xf32, #tpu.memory_space<vmem>>, vector<2x32xf32>
      tpu.vector_store %arg4[%c0_33, %c0_34], %42 {strides = array<i32>} : memref<2x32xf32, #tpu.memory_space<vmem>>, vector<2x32xf32>,
    } else {
    }
    return
  }
  func.func @transform_0(%arg0: i32, %arg1: i32) -> (i32, i32, i32) {
    %c0_i32 = arith.constant 0 : i32
    %c0_i32_0 = arith.constant 0 : i32
    return %arg0, %arg1, %c0_i32 : i32, i32, i32
  }
  func.func @transform_1(%arg0: i32, %arg1: i32) -> (i32, i32, i32) {
    %c0_i32 = arith.constant 0 : i32
    %c0_i32_0 = arith.constant 0 : i32
    %c0_i32_1 = arith.constant 0 : i32
    %c0_i32_2 = arith.constant 0 : i32
    return %c0_i32, %c0_i32_0, %c0_i32_1 : i32, i32, i32
  }
  func.func @transform_2(%arg0: i32, %arg1: i32) -> (i32, i32) {
    %c0_i32 = arith.constant 0 : i32
    %c0_i32_0 = arith.constant 0 : i32
    return %arg0, %c0_i32 : i32, i32
  }
}

</mosaic_0001>

<bundles_post_ra>
// kernel: tpu_custom_call.1
= control target key start
LH: loop header
LB: loop body
LE: loop exit
PB: predicated region body
PF: predicated region fallthrough
CT: control target
= control target key end

     0   :  { %7 = vsyncpa [#allocation6], 0  ;;  %s764_s0 = inlined_call_operand.hbm [shape: f32[2,8,32], index: 0, kind: input, shape index: {}]   ;;  %s765_s1 = inlined_call_operand.vmem [shape: f32[2,1,32], index: 1, kind: input, shape index: {}]   ;;  %s766_s2 = inlined_call_operand.hbm [shape: f32[2,32], index: 2, kind: output, shape index: {}]  }
   0x1   :  { %8 = vsyncpa [#allocation7], 0  ;;  %s672_s9 = smov [#allocation5]   ;;  %s624_s13 = scalar_lea.hbm %s764_s0, 256 }
   0x2   :  { %s14_s10 = sshll.u32 %s672_s9, 4  ;;  %p625_p0 = scmp.ne.s32.totalorder %s764_s0, %s624_s13  ;;  %s15_s10 = int_to_ptr.vmem [resolvable:$true] %s14_s10 }
   0x3   :  { %p628_p1 = scmp.lt.u32.totalorder %s624_s13, %s764_s0 }
   0x5   :  { %p630_p2 = pnand %p628_p1, %p625_p0 }
   0x7   :  { %633 = shalt.err (!%p630_p2)
}
   0x8   :  { %s634_s18 = scalar_lea.vmem %s15_s10, 256  ;;  %p639_p4 = scmp.lt.s32.totalorder %s15_s10, %s15_s10 }
   0x9   :  { %p635_p3 = scmp.ne.s32.totalorder %s15_s10, %s634_s18  ;;  %p640_p5 = scmp.lt.s32.totalorder %s634_s18, %s634_s18 }
   0xb   :  { %p641_p6 = por %p640_p5, %p639_p4 }
   0xd   :  { %p642_p7 = pnand %p641_p6, %p635_p3 }
   0xf   :  { %645 = shalt.err (!%p642_p7)
}
  0x10   :  { %s673_s19 = smov 128   ;;  %s674_s20 = smov 8  }
  0x11   :  { %20 = dma.hbm_to_vmem [thread:$0]  %s764_s0, 256, %s15_s10, [#allocation6], %s673_s19, %s673_s19, %s674_s20  }
  0x12   :  { %668 = dma.done.wait [#allocation6], 256  }
  0x13   :  { %669 = vsyncadd [#allocation6], 4294967040  ;;  %v675_v0 = vmov 0.0   ;;  %vm676_vm0 = vmmov 0   ;;  %vm41_vm1 = vcmask 261120   ;;  %v37_v1 = vld [vmem:[#allocation5] sm:$0xff]  ;;  %v216_v21 = vlaneseq }
  0x14   :  { %581 = vmatprep.subr.mxu0 %v675_v0  ;;  %583 = vmatprep.mubr.msk.f32.mxu0 %vm676_vm0, %v675_v0  ;;  %v38_v2 = vld [vmem:[#allocation5 + $0x8] sm:$0xff]  ;;  %v39_v3 = vld [vmem:[%s765_s1] sm:$0x1]  ;;  %v40_v4 = vld [vmem:[%s765_s1 + $0x1] sm:$0x1]  ;;  %vm30_vm2 = vcmask 0  }
  0x15   :  { %586 = vmatprep.subr.mxu1 %v675_v0  ;;  %588 = vmatprep.mubr.msk.f32.mxu1 %vm676_vm0, %v675_v0  ;;  %v677_v5 = vmov -inf   ;;  %33 = vst.msk [vmem:[#allocation3] sm:$0x1] %vm30_vm2, %v675_v0  ;;  %34 = vst.msk [vmem:[#allocation3 + $0x1] sm:$0x1] %vm30_vm2, %v675_v0  ;;  %vm196_vm3 = vcmask 57344  }
  0x16   :  { %582 = vmatpush3.xpose.msk.msra.mxu0 %vm41_vm1, %v37_v1  ;;  %587 = vmatpush3.xpose.msk.msra.mxu1 %vm41_vm1, %v38_v2  ;;  %31 = vst.msk [vmem:[#allocation2] sm:$0x1] %vm30_vm2, %v677_v5  ;;  %32 = vst.msk [vmem:[#allocation2 + $0x1] sm:$0x1] %vm30_vm2, %v677_v5  ;;  %v678_v12 = vmov 0   ;;  %v217_v22 = vshrl.u32 %v216_v21, 7 }
  0x17   :  { %591 = vmatprep.subr.mxu0 %v675_v0  ;;  %596 = vmatprep.subr.mxu1 %v675_v0  ;;  %vm250_vm4 = vcmask 64512   ;;  %vm35_vm5 = vcmask 254976   ;;  %v679_v58 = vmov 1966171168   ;;  %s680_s1 = smov [#allocation8]  }
  0x18   :  { %610 = vset.pattern.permute.xlu1 %v678_v12  ;;  %611 = vset.pattern.permute.xlu0 %v678_v12  ;;  %v736_v23 = vsub.s32 0, %v217_v22  ;;  %36 = vst.msk [vmem:[#allocation4] sm:$0x3] %vm35_vm5, %v675_v0  ;;  %v426_v59 = vunpack.c.l.s4 %v679_v58  ;;  %s557_s26 = sshll.u32 %s680_s1, 4  ;;  %s558_s26 = int_to_ptr.vmem [resolvable:$true] %s557_s26 }
  0x19   :  { %584 = vmatmul.mubr.msk.f32.vlgmr.msra.gmra.mrb[0].mxu0 %vm41_vm1, %v39_v3  ;;  %589 = vmatmul.mubr.msk.f32.vlgmr.msra.gmra.mrb[0].mxu1 %vm41_vm1, %v40_v4  ;;  %s646_s27 = scalar_lea.vmem %s558_s26, 32  ;;  %p651_p9 = scmp.lt.s32.totalorder %s558_s26, %s558_s26 }
  0x1a   :  { %592 = vmatpush3.msra.mxu0 %v37_v1  ;;  %593 = vmatprep.mubr.msk.f32.mxu0 %vm676_vm0, %v675_v0  ;;  %v427_v60 = vunpack.c.0.s8 %v426_v59  ;;  %p647_p8 = scmp.ne.s32.totalorder %s558_s26, %s646_s27  ;;  %p652_p10 = scmp.lt.s32.totalorder %s646_s27, %s646_s27 }
  0x1b   :  { %597 = vmatpush3.msra.mxu1 %v38_v2  ;;  %598 = vmatprep.mubr.msk.f32.mxu1 %vm676_vm0, %v675_v0 }
  0x1c   :  { %v235_v40 = vld [vmem:[#allocation3] sm:$0x1]  ;;  %v236_v43 = vld [vmem:[#allocation3 + $0x1] sm:$0x1]  ;;  %v430_v62 = vsub.s32 %v427_v60, %v217_v22  ;;  %p653_p11 = por %p652_p10, %p651_p9 }
  0x1d   :  { %v194_v13 = vld [vmem:[#allocation2] sm:$0x1]  ;;  %v195_v16 = vld [vmem:[#allocation2 + $0x1] sm:$0x1] }
  0x1e   :  { %p654_p12 = pnand %p653_p11, %p647_p8 }
  0x1f   :  { %v572_v61 = vld.sshfl [vmem:[#allocation4] sm:$0x11 pattern:$0x75316420] }
  0x20   :  { %v424_v63 = vcombine.high %v572_v61, %v572_v61 }
  0x22   :  { %v438_v5 = vrot.slane %v424_v63, %v430_v62 }
  0xec   :  { %v114_v6 = vpop.f32.mrb[0].mxu0  ;;  %v190_v7 = vpop.f32.mrb[0].mxu1 }
  0xed   :  { %v585_v8 = vpop.f32.mrb[1].mxu0  ;;  %v197_v9 = vsel %vm196_vm3, %v114_v6, -inf  ;;  %v590_v10 = vpop.f32.mrb[1].mxu1  ;;  %v200_v11 = vsel %vm196_vm3, %v190_v7, -inf }
  0xee   :  { %198 = vmax.xlane.f32.xlu0 %v197_v9 }
  0xf2   :  { %201 = vmax.xlane.f32.xlu0 %v200_v11 }
 0x17b   :  { %v199_v14 = vpop.xlane.xlu0 %198 }
 0x17c   :  { %v203_v15 = vmax.f32 %v194_v13, %v199_v14 }
 0x17e   :  { %v205_v17 = vsub.f32 %v194_v13, %v203_v15  ;;  %497 = vst.msk [vmem:[#allocation2] sm:$0x1] %vm30_vm2, %v203_v15  ;;  %213 = vperm.xlu1 %610, %v203_v15  }
 0x17f   :  { %v202_v18 = vpop.xlane.xlu0 %201 }
 0x180   :  { %v204_v19 = vmax.f32 %v195_v16, %v202_v18  ;;  %v207_v37 = vmul.f32 1.442695, %v205_v17 }
 0x182   :  { %v206_v20 = vsub.f32 %v195_v16, %v204_v19  ;;  %498 = vst.msk [vmem:[#allocation2 + $0x1] sm:$0x1] %vm30_vm2, %v204_v19  ;;  %222 = vperm.xlu1 %610, %v204_v19  }
 0x184   :  { %v209_v36 = vmul.f32 1.442695, %v206_v20 }
 0x1fd   :  { %v214_v24 = vpop.permute.xlu1 %213 }
 0x1fe   :  { %v219_v25 = vrot.slane %v214_v24, %v736_v23 }
 0x200   :  { %v229_v26 = vsub.f32 %v114_v6, %v219_v25 }
 0x201   :  { %v223_v27 = vpop.permute.xlu1 %222 }
 0x202   :  { %v231_v28 = vmul.f32 1.442695, %v229_v26  ;;  %v228_v29 = vrot.slane %v223_v27, %v736_v23 }
 0x204   :  { %612 = vpow2.f32 %v231_v28  ;;  %v230_v30 = vsub.f32 %v190_v7, %v228_v29  ;;  %v431_v7 = vrot.slane %v572_v61, %v430_v62 }
 0x206   :  { %v233_v31 = vmul.f32 1.442695, %v230_v30 }
 0x208   :  { %614 = vpow2.f32 %v233_v31 }
 0x209   :  { %616 = vpow2.f32 %v209_v36 }
 0x20a   :  { %618 = vpow2.f32 %v207_v37 }
 0x20e   :  { %v613_v32 = vpop.eup %612 }
 0x20f   :  { %594 = vmatmul.mubr.msk.f32.vlgmr.msra.gmra.mrb[2].mxu0 %vm250_vm4, %v613_v32  ;;  %v239_v33 = vsel %vm196_vm3, %v613_v32, 0.0 }
 0x210   :  { %240 = vadd.xlane.f32.xlu0 %v239_v33 }
 0x212   :  { %v615_v34 = vpop.eup %614 }
 0x213   :  { %599 = vmatmul.mubr.msk.f32.vlgmr.msra.gmra.mrb[2].mxu1 %vm250_vm4, %v615_v34  ;;  %v242_v35 = vsel %vm196_vm3, %v615_v34, 0.0  ;;  %v617_v38 = vpop.eup %616 }
 0x214   :  { %243 = vadd.xlane.f32.xlu1 %v242_v35  ;;  %v619_v39 = vpop.eup %618  ;;  %v238_v45 = vmul.f32 %v617_v38, %v236_v43 }
 0x215   :  { %v237_v41 = vmul.f32 %v619_v39, %v235_v40 }
 0x225   :  { %409 = vperm.xlu1 %610, %v617_v38  }
 0x226   :  { %400 = vperm.xlu0 %611, %v619_v39  }
 0x29d   :  { %v241_v42 = vpop.xlane.xlu0 %240 }
 0x29e   :  { %v245_v44 = vadd.f32 %v241_v42, %v237_v41 }
 0x2a0   :  { %248 = vst.msk [vmem:[#allocation3] sm:$0x1] %vm30_vm2, %v245_v44 }
 0x2a1   :  { %v244_v46 = vpop.xlane.xlu1 %243 }
 0x2a2   :  { %v246_v47 = vadd.f32 %v244_v46, %v238_v45 }
 0x2a4   :  { %249 = vst.msk [vmem:[#allocation3 + $0x1] sm:$0x1] %vm30_vm2, %v246_v47 }
 0x2a5   :  { %v410_v0 = vpop.permute.xlu1 %409  ;;  %v401_v1 = vpop.permute.xlu0 %400 }
 0x2a6   :  { %v415_v6 = vrot.slane %v410_v0, %v736_v23  ;;  %v406_v8 = vrot.slane %v401_v1, %v736_v23 }
 0x2a7   :  { %v502_v48 = vld [vmem:[#allocation3] sm:$0x1] }
 0x2a8   :  { %620 = vrcp.f32 %v502_v48  ;;  %v442_v13 = vmul.f32 %v438_v5, %v415_v6  ;;  %v441_v14 = vmul.f32 %v431_v7, %v406_v8 }
 0x2ab   :  { %v503_v49 = vld [vmem:[#allocation3 + $0x1] sm:$0x1] }
 0x2ac   :  { %622 = vrcp.f32 %v503_v49 }
 0x2b2   :  { %v621_v50 = vpop.eup %620 }
 0x2b3   :  { %v506_v51 = vmul.f32 %v621_v50, %v502_v48 }
 0x2b5   :  { %v508_v52 = vsub.f32 2.0, %v506_v51 }
 0x2b6   :  { %v623_v53 = vpop.eup %622 }
 0x2b7   :  { %v510_v54 = vmul.f32 %v621_v50, %v508_v52  ;;  %v507_v55 = vmul.f32 %v623_v53, %v503_v49 }
 0x2b9   :  { %515 = vperm.xlu0 %611, %v510_v54   ;;  %v509_v56 = vsub.f32 2.0, %v507_v55 }
 0x2bb   :  { %v511_v57 = vmul.f32 %v623_v53, %v509_v56 }
 0x2bd   :  { %524 = vperm.xlu0 %611, %v511_v57  }
 0x2e2   :  { %v320_v2 = vpop.f32.mrb[2].mxu0 }
 0x2e3   :  { %v451_v3 = vrot.slane %v320_v2, %v430_v62  ;;  %v595_v4 = vpop.f32.mrb[3].mxu0 }
 0x2e5   :  { %v458_v10 = vrot.slane %v451_v3, %v430_v62 }
 0x2e6   :  { %v393_v9 = vpop.f32.mrb[2].mxu1 }
 0x2e7   :  { %v465_v11 = vrot.slane %v393_v9, %v430_v62  ;;  %v600_v12 = vpop.f32.mrb[3].mxu1  ;;  %v475_v16 = vadd.f32 %v458_v10, %v441_v14 }
 0x2e9   :  { %v472_v15 = vrot.slane %v465_v11, %v430_v62 }
 0x2eb   :  { %v476_v17 = vadd.f32 %v472_v15, %v442_v13 }
 0x2ed   :  { %v479_v18 = vcombine.low %v475_v16, %v476_v17 }
 0x2ef   :  { %v486_v19 = vrot.slane %v479_v18, %v430_v62 }
 0x2f1   :  { %v493_v20 = vrot.slane %v486_v19, %v430_v62 }
 0x2f3   :  { %496 = vst.msk [vmem:[#allocation4] sm:$0x3] %vm35_vm5, %v493_v20 }
 0x2fa   :  { %v512_v29 = vld [vmem:[#allocation4] sm:$0x3] }
 0x338   :  { %v516_v21 = vpop.permute.xlu0 %515 }
 0x339   :  { %v521_v24 = vrot.slane %v516_v21, %v736_v23 }
 0x33c   :  { %v525_v22 = vpop.permute.xlu0 %524 }
 0x33d   :  { %v530_v25 = vrot.slane %v525_v22, %v736_v23 }
 0x33f   :  { %v533_v26 = vcombine.low %v521_v24, %v530_v25 }
 0x341   :  { %v540_v27 = vrot.slane %v533_v26, %v430_v62 }
 0x343   :  { %v547_v28 = vrot.slane %v540_v27, %v430_v62 }
 0x345   :  { %v549_v30 = vmul.f32 %v547_v28, %v512_v29 }
 0x347   :  { %550 = vst.msk [vmem:[#allocation8] sm:$0x3] %vm35_vm5, %v549_v30 }
 0x348   :  { %657 = shalt.err (!%p654_p12)
}
 0x349   :  { %s658_s30 = scalar_lea.hbm %s766_s2, 32 }
 0x34a   :  { %p659_p13 = scmp.ne.s32.totalorder %s766_s2, %s658_s30  ;;  %p662_p0 = scmp.lt.u32.totalorder %s658_s30, %s766_s2 }
 0x34c   :  { %p664_p1 = pnand %p662_p0, %p659_p13 }
 0x34e   :  { %667 = shalt.err (!%p664_p1)
}
 0x34f   :  { %560 = dma.vmem_to_hbm [thread:$0]  %s558_s26, 32, %s766_s2, [#allocation7]  }
 0x350   :  { %670 = dma.done.wait [#allocation7], 32  }
 0x351   :  { %671 = vsyncadd [#allocation7], 4294967264 }
 0x352   :  { %564 = vsyncpa [#allocation6], 1 }
 0x353   :  { %565 = vsyncpa [#allocation7], 1 }

</bundles_post_ra>
